<compile_context>
chip_gen: v5e
topology: v5e:2x2
jax: 0.10.0
libtpu: 0.0.40
codegen_flags: <defaults>
</compile_context>

<pallas_src>
import math

import jax
import jax.numpy as jnp
from jax.experimental import pallas as pl
from jax.experimental.pallas import tpu as pltpu

LANE = 128
SUBLANE = 8


# ----------------------------------------------------------------------------- kernel
def _make_kernel(ew_dtype):
    """Build the kernel with a chosen elementwise dtype (f32 default; bf16 for v6e/v7x)."""

    def es2_kernel(
        x_ref,      # (TB, 2F)        f32   current + next scan (one batch tile)
        slab_ref,   # (8,  F)         f32   rows: k, b1, b2, b3_pad, scale, shift, 0, 0
        w_ref,      # (F,  2F+Ap)     bf16  [w1 | w2 | w3_pad], all (in, out)
        o_ref,      # (TB, Ap)        f32
    ):
        F = slab_ref.shape[1]
        A_pad = o_ref.shape[1]

        x = x_ref[...].astype(ew_dtype)          # (TB, 2F)
        sample = x[:, :F]
        sample_next = x[:, F:]

        k     = slab_ref[0:1, :].astype(ew_dtype)   # (1, F)
        b1    = slab_ref[1:2, :]                    # (1, F)  biases added to f32 acc
        b2    = slab_ref[2:3, :]                    # (1, F)
        b3    = slab_ref[3:4, :A_pad]               # (1, Ap)
        scale = slab_ref[4:5, :].astype(ew_dtype)   # (1, F)  folded delta_proj
        shift = slab_ref[5:6, :].astype(ew_dtype)   # (1, F)

        # (-1/(1+exp(-k*x)) + 1) * 2  ==  1 - tanh(0.5*k*x)   (EUP tanh, no f32 divide)
        def spatial_sigmoid(v):
            return (1.0 - jnp.tanh(0.5 * k * v)).astype(ew_dtype)

        s_sig = spatial_sigmoid(sample)              # (TB, F)
        sn_sig = spatial_sigmoid(sample_next)        # (TB, F)
        # delta_proj folded: Linear(1,8) -> Linear(8,1) with no activation is affine.
        spatial_sense = ((sn_sig - s_sig) * scale + shift) * sn_sig

        # Static, 128-lane-aligned slices of the merged weight slab (free).
        w1 = w_ref[:, :F]
        w2 = w_ref[:, F:2 * F]
        w3 = w_ref[:, 2 * F:]

        # sense_action_layers: Linear+ReLU, Linear+ReLU, Linear (bf16 MXU, f32 accumulation)
        h1 = jnp.dot(spatial_sense.astype(jnp.bfloat16), w1,
                     preferred_element_type=jnp.float32) + b1
        h1 = jnp.maximum(h1, 0.0)
        h2 = jnp.dot(h1.astype(jnp.bfloat16), w2,
                     preferred_element_type=jnp.float32) + b2
        h2 = jnp.maximum(h2, 0.0)
        out = jnp.dot(h2.astype(jnp.bfloat16), w3,
                      preferred_element_type=jnp.float32) + b3
        o_ref[...] = out.astype(o_ref.dtype)

    return es2_kernel


# ----------------------------------------------------------------------------- packing
def pack_params(params, num_actions):
    """Fold delta_proj and pack all small operands into two slabs (PyTorch-convention in)."""
    F = params["k"].shape[0]
    A = num_actions
    # Lane-dense output and x split both assume a lane-aligned feature dim.
    assert F % LANE == 0, "F must be a multiple of 128 (else split x into two (B,F) operands)"
    A_pad = ((A + LANE - 1) // LANE) * LANE
    assert A_pad <= F, "b3 packing assumes the padded action dim fits in F lanes"

    # Linear(1,8) -> Linear(8,1), no activation  =>  d = delta*scale + shift
    scale = jnp.dot(params["dp_w2"][0, :], params["dp_w1"][:, 0])
    shift = jnp.dot(params["dp_w2"][0, :], params["dp_b1"]) + params["dp_b2"][0]

    slab = jnp.zeros((SUBLANE, F), jnp.float32)
    slab = slab.at[0, :].set(params["k"])
    slab = slab.at[1, :].set(params["b1"])
    slab = slab.at[2, :].set(params["b2"])
    slab = slab.at[3, :A].set(params["b3"])
    slab = slab.at[4, :].set(scale)
    slab = slab.at[5, :].set(shift)

    # Single merged bf16 weight slab: [w1 | w2 | w3_pad], all stored (in, out).
    w = jnp.zeros((F, 2 * F + A_pad), jnp.bfloat16)
    w = w.at[:, :F].set(params["w1"].T.astype(jnp.bfloat16))
    w = w.at[:, F:2 * F].set(params["w2"].T.astype(jnp.bfloat16))
    w = w.at[:, 2 * F:2 * F + A].set(params["w3"].T.astype(jnp.bfloat16))

    return {"slab": slab, "w": w, "F": F, "A": A, "A_pad": A_pad}


# ----------------------------------------------------------------------------- wrapper
def es2_forward(x, packed, *, tile_b=512, elementwise_dtype=jnp.float32):
    """Run the fused Es2Model forward. elementwise_dtype=jnp.bfloat16 is valid on v6e/v7x."""
    B = x.shape[0]
    F, A, A_pad = packed["F"], packed["A"], packed["A_pad"]
    assert x.shape[1] == 2 * F

    # Batch tile: sublane-aligned, capped so VMEM stays small even on v7x (64 MiB).
    tb = min(tile_b, ((B + SUBLANE - 1) // SUBLANE) * SUBLANE)
    tb = max(SUBLANE, ((tb + SUBLANE - 1) // SUBLANE) * SUBLANE)
    n_tiles = pl.cdiv(B, tb)
    Bp = n_tiles * tb
    x_pad = jnp.pad(x.astype(jnp.float32), ((0, Bp - B), (0, 0)))

    w_cols = 2 * F + A_pad
    cost = pl.CostEstimate(
        flops=2 * Bp * F * w_cols,
        transcendentals=2 * Bp * F,
        bytes_accessed=Bp * 2 * F * 4 + SUBLANE * F * 4 + F * w_cols * 2 + Bp * A_pad * 4,
    )

    out = pl.pallas_call(
        _make_kernel(elementwise_dtype),
        out_shape=jax.ShapeDtypeStruct((Bp, A_pad), jnp.float32),
        grid_spec=pltpu.PrefetchScalarGridSpec(
            num_scalar_prefetch=0,
            grid=(n_tiles,),
            in_specs=[
                pl.BlockSpec((tb, 2 * F), lambda i: (i, 0)),          # x: tiled over batch
                pl.BlockSpec((SUBLANE, F), lambda i: (0, 0)),         # param slab: resident
                pl.BlockSpec((F, w_cols), lambda i: (0, 0)),          # weight slab: resident
            ],
            out_specs=pl.BlockSpec((tb, A_pad), lambda i: (i, 0)),
        ),
        compiler_params=pltpu.CompilerParams(
            dimension_semantics=("parallel",),   # shard batch tiles across v7x's 2 TCs
        ),
        cost_estimate=cost,
    )(x_pad, packed["slab"], packed["w"])
    return out[:B, :A]


# ----------------------------------------------------------------------------- params
def xavier_uniform(key, fan_out, fan_in):
    limit = math.sqrt(6.0 / (fan_in + fan_out))
    return jax.random.uniform(key, (fan_out, fan_in), jnp.float32, -limit, limit)


def make_params(key, num_features, num_actions, sensing_range):
    keys = jax.random.split(key, 5)
    # k initialized with inverse_sigmoid(sensing_range, 0.01)
    k_init = -1.0 / sensing_range * math.log(0.01 / (2.0 - 0.01))
    return {
        "k": jnp.full((num_features,), k_init, jnp.float32),
        "dp_w1": xavier_uniform(keys[0], 8, 1),           # Linear(1,8).weight (8,1)
        "dp_b1": jnp.zeros((8,), jnp.float32),
        "dp_w2": xavier_uniform(keys[1], 1, 8),           # Linear(8,1).weight (1,8)
        "dp_b2": jnp.zeros((1,), jnp.float32),
        "w1": xavier_uniform(keys[2], num_features, num_features),   # (out, in)
        "b1": jnp.zeros((num_features,), jnp.float32),
        "w2": xavier_uniform(keys[3], num_features, num_features),
        "b2": jnp.zeros((num_features,), jnp.float32),
        "w3": xavier_uniform(keys[4], num_actions, num_features),
        "b3": jnp.zeros((num_actions,), jnp.float32),
    }


# ----------------------------------------------------------------------------- pure-JAX reference
def es2_reference(x, params):
    """Straight f32 transliteration of the PyTorch module (unfolded delta_proj)."""
    B = x.shape[0]
    F = params["k"].shape[0]
    k = params["k"][None, :]
    sample, sample_next = x[:, :F], x[:, F:]

    def sig(v):
        return (-1.0 / (1.0 + jnp.exp(-k * v)) + 1.0) * 2.0

    s_sig, sn_sig = sig(sample), sig(sample_next)
    delta = (sn_sig - s_sig).reshape(-1, 1)                        # (B*F, 1)
    h = delta @ params["dp_w1"].T + params["dp_b1"][None, :]       # (B*F, 8)
    d = h @ params["dp_w2"].T + params["dp_b2"][None, :]           # (B*F, 1)
    spatial = d.reshape(B, F) * sn_sig
    h1 = jnp.maximum(spatial @ params["w1"].T + params["b1"][None, :], 0.0)
    h2 = jnp.maximum(h1 @ params["w2"].T + params["b2"][None, :], 0.0)
    return h2 @ params["w3"].T + params["b3"][None, :]


# ----------------------------------------------------------------------------- main
if __name__ == "__main__":
    # features=128 (LiDAR-style scan), input dim = 2*features, actions=2 (steer, throttle)
    F, A = 128, 2
    SENSING_RANGE = 10.0

    key = jax.random.PRNGKey(0)
    k_params, k_x1, k_x2 = jax.random.split(key, 3)
    params = make_params(k_params, F, A, SENSING_RANGE)
    packed = pack_params(params, A)

    # --- small batch (single tile, grid=(1,)) --------------------------------
    B_small = 4
    x_small = jax.random.uniform(k_x1, (B_small, 2 * F), jnp.float32, 0.0, SENSING_RANGE)
    out_small = jax.block_until_ready(es2_forward(x_small, packed))
    ref_small = es2_reference(x_small, params)
    assert out_small.shape == (B_small, A)
    # bf16 MXU operands with f32 accumulation -> tolerance looser than pure f32.
    assert jnp.allclose(out_small, ref_small, atol=2e-2, rtol=2e-2), (out_small, ref_small)

    # --- batched path (multiple grid tiles, weights DMA'd once and resident) --
    B_big = 640
    x_big = jax.random.uniform(k_x2, (B_big, 2 * F), jnp.float32, 0.0, SENSING_RANGE)
    out_big = jax.block_until_ready(es2_forward(x_big, packed, tile_b=512))
    ref_big = es2_reference(x_big, params)
    assert out_big.shape == (B_big, A)
    # Max over 1280 outputs of three chained bf16-operand matmuls -> slightly looser bound.
    assert jnp.allclose(out_big, ref_big, atol=5e-2, rtol=5e-2), (out_big, ref_big)

    print("KERNEL_OK")
</pallas_src>

<mosaic_0001>
module attributes {stable_mosaic.version = 11 : i64} {
  func.func @es2_kernel(%arg0: i32, %arg1: memref<8x256xf32, #tpu.memory_space<vmem>>, %arg2: memref<8x128xf32, #tpu.memory_space<vmem>>, %arg3: memref<128x384xbf16, #tpu.memory_space<vmem>>, %arg4: memref<8x128xf32, #tpu.memory_space<vmem>>) attributes {dimension_semantics = [#tpu.dimension_semantics<parallel>], iteration_bounds = array<i64: 1>, scalar_prefetch = 0 : i64, scratch_operands = 0 : i64, tpu.core_type = #tpu.core_type<tc>, window_params = [{transform_indices = @transform_0, window_bounds = array<i64: 8, 256>}, {pipeline_mode = #tpu.pipeline_mode<synchronous>, transform_indices = @transform_1, window_bounds = array<i64: 8, 128>}, {pipeline_mode = #tpu.pipeline_mode<synchronous>, transform_indices = @transform_2, window_bounds = array<i64: 128, 384>}, {transform_indices = @transform_3, window_bounds = array<i64: 8, 128>}]} {
    %c0 = arith.constant 0 : index
    %c0_0 = arith.constant 0 : index
    %0 = vector.load %arg1[%c0, %c0_0] : memref<8x256xf32, #tpu.memory_space<vmem>>, vector<8x256xf32>
    %1 = vector.extract_strided_slice %0 {offsets = [0, 0], sizes = [8, 128], strides = [1, 1]} : vector<8x256xf32> to vector<8x128xf32>
    %2 = vector.extract_strided_slice %0 {offsets = [0, 128], sizes = [8, 128], strides = [1, 1]} : vector<8x256xf32> to vector<8x128xf32>
    %c0_1 = arith.constant 0 : index
    %c0_2 = arith.constant 0 : index
    %3 = vector.load %arg2[%c0_1, %c0_2] : memref<8x128xf32, #tpu.memory_space<vmem>>, vector<1x128xf32>
    %c1 = arith.constant 1 : index
    %c0_3 = arith.constant 0 : index
    %4 = vector.load %arg2[%c1, %c0_3] : memref<8x128xf32, #tpu.memory_space<vmem>>, vector<1x128xf32>
    %c2 = arith.constant 2 : index
    %c0_4 = arith.constant 0 : index
    %5 = vector.load %arg2[%c2, %c0_4] : memref<8x128xf32, #tpu.memory_space<vmem>>, vector<1x128xf32>
    %c3 = arith.constant 3 : index
    %c0_5 = arith.constant 0 : index
    %6 = vector.load %arg2[%c3, %c0_5] : memref<8x128xf32, #tpu.memory_space<vmem>>, vector<1x128xf32>
    %c4 = arith.constant 4 : index
    %c0_6 = arith.constant 0 : index
    %7 = vector.load %arg2[%c4, %c0_6] : memref<8x128xf32, #tpu.memory_space<vmem>>, vector<1x128xf32>
    %c5 = arith.constant 5 : index
    %c0_7 = arith.constant 0 : index
    %8 = vector.load %arg2[%c5, %c0_7] : memref<8x128xf32, #tpu.memory_space<vmem>>, vector<1x128xf32>
    %cst = arith.constant 5.000000e-01 : f32
    %9 = vector.broadcast %cst : f32 to vector<1x128xf32>
    %10 = arith.mulf %9, %3 : vector<1x128xf32>
    %11 = vector.broadcast %10 : vector<1x128xf32> to vector<8x128xf32>
    %12 = arith.mulf %11, %1 : vector<8x128xf32>
    %13 = math.tanh %12 : vector<8x128xf32>
    %cst_8 = arith.constant 1.000000e+00 : f32
    %14 = vector.broadcast %cst_8 : f32 to vector<8x128xf32>
    %15 = arith.subf %14, %13 : vector<8x128xf32>
    %cst_9 = arith.constant 5.000000e-01 : f32
    %16 = vector.broadcast %cst_9 : f32 to vector<1x128xf32>
    %17 = arith.mulf %16, %3 : vector<1x128xf32>
    %18 = vector.broadcast %17 : vector<1x128xf32> to vector<8x128xf32>
    %19 = arith.mulf %18, %2 : vector<8x128xf32>
    %20 = math.tanh %19 : vector<8x128xf32>
    %cst_10 = arith.constant 1.000000e+00 : f32
    %21 = vector.broadcast %cst_10 : f32 to vector<8x128xf32>
    %22 = arith.subf %21, %20 : vector<8x128xf32>
    %23 = arith.subf %22, %15 : vector<8x128xf32>
    %24 = vector.broadcast %7 : vector<1x128xf32> to vector<8x128xf32>
    %25 = arith.mulf %23, %24 : vector<8x128xf32>
    %26 = vector.broadcast %8 : vector<1x128xf32> to vector<8x128xf32>
    %27 = arith.addf %25, %26 : vector<8x128xf32>
    %28 = arith.mulf %27, %22 : vector<8x128xf32>
    %c0_11 = arith.constant 0 : index
    %c0_12 = arith.constant 0 : index
    %29 = vector.load %arg3[%c0_11, %c0_12] : memref<128x384xbf16, #tpu.memory_space<vmem>>, vector<128x128xbf16>
    %c0_13 = arith.constant 0 : index
    %c128 = arith.constant 128 : index
    %30 = vector.load %arg3[%c0_13, %c128] : memref<128x384xbf16, #tpu.memory_space<vmem>>, vector<128x128xbf16>
    %c0_14 = arith.constant 0 : index
    %c256 = arith.constant 256 : index
    %31 = vector.load %arg3[%c0_14, %c256] : memref<128x384xbf16, #tpu.memory_space<vmem>>, vector<128x128xbf16>
    %32 = arith.truncf %28 : vector<8x128xf32> to vector<8x128xbf16>
    %cst_15 = arith.constant dense<0.000000e+00> : vector<8x128xf32>
    %33 = tpu.matmul %32, %29, %cst_15 {dimension_numbers = #tpu.dot_dimension_numbers<[1], [0], [0], [1], [0, 0, 1, 1], [], []>} : vector<8x128xbf16>, vector<128x128xbf16>, vector<8x128xf32> -> vector<8x128xf32>
    %34 = vector.broadcast %4 : vector<1x128xf32> to vector<8x128xf32>
    %35 = arith.addf %33, %34 : vector<8x128xf32>
    %cst_16 = arith.constant 0.000000e+00 : f32
    %36 = vector.broadcast %cst_16 : f32 to vector<8x128xf32>
    %37 = arith.maximumf %35, %36 : vector<8x128xf32>
    %38 = arith.truncf %37 : vector<8x128xf32> to vector<8x128xbf16>
    %cst_17 = arith.constant dense<0.000000e+00> : vector<8x128xf32>
    %39 = tpu.matmul %38, %30, %cst_17 {dimension_numbers = #tpu.dot_dimension_numbers<[1], [0], [0], [1], [0, 0, 1, 1], [], []>} : vector<8x128xbf16>, vector<128x128xbf16>, vector<8x128xf32> -> vector<8x128xf32>
    %40 = vector.broadcast %5 : vector<1x128xf32> to vector<8x128xf32>
    %41 = arith.addf %39, %40 : vector<8x128xf32>
    %cst_18 = arith.constant 0.000000e+00 : f32
    %42 = vector.broadcast %cst_18 : f32 to vector<8x128xf32>
    %43 = arith.maximumf %41, %42 : vector<8x128xf32>
    %44 = arith.truncf %43 : vector<8x128xf32> to vector<8x128xbf16>
    %cst_19 = arith.constant dense<0.000000e+00> : vector<8x128xf32>
    %45 = tpu.matmul %44, %31, %cst_19 {dimension_numbers = #tpu.dot_dimension_numbers<[1], [0], [0], [1], [0, 0, 1, 1], [], []>} : vector<8x128xbf16>, vector<128x128xbf16>, vector<8x128xf32> -> vector<8x128xf32>
    %46 = vector.broadcast %6 : vector<1x128xf32> to vector<8x128xf32>
    %47 = arith.addf %45, %46 : vector<8x128xf32>
    %c0_20 = arith.constant 0 : index
    %c0_21 = arith.constant 0 : index
    %48 = vector.load %arg4[%c0_20, %c0_21] : memref<8x128xf32, #tpu.memory_space<vmem>>, vector<8x128xf32>
    tpu.vector_store %arg4[%c0_20, %c0_21], %47 {strides = array<i32>} : memref<8x128xf32, #tpu.memory_space<vmem>>, vector<8x128xf32>,
    return
  }
  func.func @transform_0(%arg0: i32) -> (i32, i32) {
    %c0_i32 = arith.constant 0 : i32
    %c0_i32_0 = arith.constant 0 : i32
    return %arg0, %c0_i32 : i32, i32
  }
  func.func @transform_1(%arg0: i32) -> (i32, i32) {
    %c0_i32 = arith.constant 0 : i32
    %c0_i32_0 = arith.constant 0 : i32
    %c0_i32_1 = arith.constant 0 : i32
    return %c0_i32, %c0_i32_0 : i32, i32
  }
  func.func @transform_2(%arg0: i32) -> (i32, i32) {
    %c0_i32 = arith.constant 0 : i32
    %c0_i32_0 = arith.constant 0 : i32
    %c0_i32_1 = arith.constant 0 : i32
    return %c0_i32, %c0_i32_0 : i32, i32
  }
  func.func @transform_3(%arg0: i32) -> (i32, i32) {
    %c0_i32 = arith.constant 0 : i32
    %c0_i32_0 = arith.constant 0 : i32
    return %arg0, %c0_i32 : i32, i32
  }
}

</mosaic_0001>

<bundles_post_ra>
// kernel: tpu_custom_call.1
= control target key start
LH: loop header
LB: loop body
LE: loop exit
PB: predicated region body
PF: predicated region fallthrough
CT: control target
= control target key end

     0   :  { %8 = vsyncpa [#allocation3], 0  ;;  %s613_s0 = inlined_call_operand.hbm [shape: f32[8,256], index: 0, kind: input, shape index: {}]   ;;  %s614_s1 = inlined_call_operand.hbm [shape: f32[8,128], index: 1, kind: input, shape index: {}]   ;;  %s615_s2 = inlined_call_operand.hbm [shape: bf16[128,384], index: 2, kind: input, shape index: {}]   ;;  %s616_s3 = inlined_call_operand.hbm [shape: f32[8,128], index: 3, kind: output, shape index: {}]  }
   0x1   :  { %9 = vsyncpa [#allocation6], 0  ;;  %s27_s14 = sshll.u32 %s614_s1, 4  ;;  %s28_s14 = int_to_ptr.hbm [resolvable:$true] %s27_s14 }
   0x2   :  { %10 = vsyncpa [#allocation4], 0  ;;  %s575_s15 = smov [#allocation5]   ;;  %s16_s19 = sshll.u32 %s613_s0, 4  ;;  %s17_s19 = int_to_ptr.hbm [resolvable:$true] %s16_s19 }
   0x3   :  { %s29_s16 = sshll.u32 %s575_s15, 4  ;;  %s576_s20 = smov [#allocation2]   ;;  %s30_s16 = int_to_ptr.vmem [resolvable:$true] %s29_s16 }
   0x4   :  { %32 = dma.hbm_to_vmem [thread:$0]  %s28_s14, 128, %s30_s16, [#allocation6]  }
   0x5   :  { %s18_s21 = sshll.u32 %s576_s20, 4  ;;  %s37_s24 = sshll.u32 %s615_s2, 4  ;;  %s19_s21 = int_to_ptr.vmem [resolvable:$true] %s18_s21  ;;  %s38_s24 = int_to_ptr.hbm [resolvable:$true] %s37_s24 }
   0x6   :  { %21 = dma.hbm_to_vmem [thread:$0]  %s17_s19, 256, %s19_s21, [#allocation3]  }
   0x7   :  { %s577_s1 = smov [#allocation7]   ;;  %s578_s26 = smov 192  }
   0x8   :  { %s39_s25 = sshll.u32 %s577_s1, 4  ;;  %s579_s27 = smov 12   ;;  %s40_s25 = int_to_ptr.vmem [resolvable:$true] %s39_s25 }
   0x9   :  { %45 = dma.hbm_to_vmem [thread:$0]  %s38_s24, 3072, %s40_s25, [#allocation6], %s578_s26, %s578_s26, %s579_s27  }
   0xa   :  { %569 = dma.done.wait [#allocation3], 256  }
   0xb   :  { %570 = vsyncadd [#allocation3], 4294967040 }
   0xc   :  { %571 = dma.done.wait [#allocation6], 3200  }
   0xd   :  { %572 = vsyncadd [#allocation6], 4294964096  ;;  %v368_v0 = vld [vmem:[#allocation7 + $0xa8] sm:$0xf]  ;;  %v441_v1 = vld [vmem:[#allocation7 + $0xb0] sm:$0xf0] }
   0xe   :  { %v364_v2 = vld [vmem:[#allocation7 + $0x90] sm:$0xf]  ;;  %v369_v3 = vor.u32 %v441_v1, %v368_v0  ;;  %v440_v4 = vld [vmem:[#allocation7 + $0x98] sm:$0xf0]  ;;  %v360_v6 = vld [vmem:[#allocation7 + $0x78] sm:$0xf] }
   0xf   :  { %v365_v5 = vor.u32 %v440_v4, %v364_v2  ;;  %v439_v7 = vld [vmem:[#allocation7 + $0x80] sm:$0xf0]  ;;  %v356_v8 = vld [vmem:[#allocation7 + $0x60] sm:$0xf]  ;;  %v60_v9 = vld [vmem:[#allocation5] sm:$0x1] }
  0x10   :  { %178 = vmatpush.bf16.msra.mxu0 %v369_v3  ;;  %v361_v10 = vor.u32 %v439_v7, %v360_v6  ;;  %v438_v11 = vld [vmem:[#allocation7 + $0x68] sm:$0xf0]  ;;  %v59_v13 = vld [vmem:[#allocation2 + $0x8] sm:$0xff]  ;;  %v66_v14 = vmul.f32 0.5, %v60_v9  ;;  %v449_v16 = vld [vmem:[#allocation7 + $0xb4] sm:$0xf0] }
  0x11   :  { %v58_v12 = vld [vmem:[#allocation2] sm:$0xff]  ;;  %v396_v17 = vld [vmem:[#allocation7 + $0x94] sm:$0xf]  ;;  %v448_v20 = vld [vmem:[#allocation7 + $0x9c] sm:$0xf0]  ;;  %v357_v21 = vor.u32 %v438_v11, %v356_v8  ;;  %s580_s0 = smov [#allocation8]  }
  0x12   :  { %v400_v15 = vld [vmem:[#allocation7 + $0xac] sm:$0xf]  ;;  %v67_v18 = vperm.slane %v66_v14, 0  ;;  %v352_v22 = vld [vmem:[#allocation7 + $0x48] sm:$0xf]  ;;  %v397_v26 = vor.u32 %v448_v20, %v396_v17  ;;  %s325_s2 = sshll.u32 %s580_s0, 4  ;;  %s326_s2 = int_to_ptr.vmem [resolvable:$true] %s325_s2 }
  0x13   :  { %v401_v19 = vor.u32 %v449_v16, %v400_v15  ;;  %v437_v23 = vld [vmem:[#allocation7 + $0x50] sm:$0xf0]  ;;  %v392_v27 = vld [vmem:[#allocation7 + $0x7c] sm:$0xf]  ;;  %v447_v28 = vld [vmem:[#allocation7 + $0x84] sm:$0xf0] }
  0x14   :  { %179 = vmatpush.bf16.msra.mxu0 %v365_v5  ;;  %v68_v24 = vmul.f32 %v67_v18, %v58_v12  ;;  %v71_v25 = vmul.f32 %v67_v18, %v59_v13  ;;  %v353_v29 = vor.u32 %v437_v23, %v352_v22  ;;  %v348_v30 = vld [vmem:[#allocation7 + $0x30] sm:$0xf]  ;;  %v393_v31 = vor.u32 %v447_v28, %v392_v27  ;;  %v436_v32 = vld [vmem:[#allocation7 + $0x38] sm:$0xf0]  ;;  %v388_v33 = vld [vmem:[#allocation7 + $0x64] sm:$0xf] }
  0x15   :  { %242 = vmatpush.bf16.msra.mxu1 %v401_v19  ;;  %v446_v34 = vld [vmem:[#allocation7 + $0x6c] sm:$0xf0]  ;;  %v349_v36 = vor.u32 %v436_v32, %v348_v30  ;;  %v344_v37 = vld [vmem:[#allocation7 + $0x18] sm:$0xf]  ;;  %v435_v38 = vld [vmem:[#allocation7 + $0x20] sm:$0xf0] }
  0x16   :  { %469 = vtanh.f32 %v68_v24  ;;  %v389_v39 = vor.u32 %v446_v34, %v388_v33  ;;  %v384_v42 = vld [vmem:[#allocation7 + $0x4c] sm:$0xf]  ;;  %v445_v43 = vld [vmem:[#allocation7 + $0x54] sm:$0xf0]  ;;  %v464_v45 = vld [vmem:[#allocation5 + $0x4] ss:$0 sm:$0xff]  ;;  %v345_v46 = vor.u32 %v435_v38, %v344_v37 }
  0x17   :  { %471 = vtanh.f32 %v71_v25  ;;  %v340_v47 = vld [vmem:[#allocation7] sm:$0xf]  ;;  %v465_v49 = vld [vmem:[#allocation5 + $0x5] ss:$0 sm:$0xff]  ;;  %v385_v50 = vor.u32 %v445_v43, %v384_v42  ;;  %v434_v51 = vld [vmem:[#allocation7 + $0x8] sm:$0xf0] }
  0x18   :  { %180 = vmatpush.bf16.msra.mxu0 %v361_v10  ;;  %v380_v52 = vld [vmem:[#allocation7 + $0x34] sm:$0xf]  ;;  %v444_v53 = vld [vmem:[#allocation7 + $0x3c] sm:$0xf0]  ;;  %v341_v55 = vor.u32 %v434_v51, %v340_v47  ;;  %v376_v60 = vld [vmem:[#allocation7 + $0x1c] sm:$0xf] }
  0x19   :  { %243 = vmatpush.bf16.msra.mxu1 %v397_v26  ;;  %v381_v57 = vor.u32 %v444_v53, %v380_v52  ;;  %v443_v61 = vld [vmem:[#allocation7 + $0x24] sm:$0xf0]  ;;  %v372_v63 = vld [vmem:[#allocation7 + $0x4] sm:$0xf]  ;;  %v442_v0 = vld [vmem:[#allocation7 + $0xc] sm:$0xf0] }
  0x1a   :  { %v377_v62 = vor.u32 %v443_v61, %v376_v60  ;;  %v373_v1 = vor.u32 %v442_v0, %v372_v63  ;;  %v432_v2 = vld [vmem:[#allocation7 + $0xb0] sm:$0xf]  ;;  %v457_v3 = vld [vmem:[#allocation7 + $0xb8] sm:$0xf0]  ;;  %v428_v4 = vld [vmem:[#allocation7 + $0x98] sm:$0xf] }
  0x1b   :  { %v433_v5 = vor.u32 %v457_v3, %v432_v2  ;;  %v456_v6 = vld [vmem:[#allocation7 + $0xa0] sm:$0xf0]  ;;  %v424_v8 = vld [vmem:[#allocation7 + $0x80] sm:$0xf]  ;;  %v455_v9 = vld [vmem:[#allocation7 + $0x88] sm:$0xf0] }
  0x1c   :  { %181 = vmatpush.bf16.msra.mxu0 %v357_v21  ;;  %v470_v35 = vpop.eup %469  ;;  %v429_v7 = vor.u32 %v456_v6, %v428_v4  ;;  %v425_v10 = vor.u32 %v455_v9, %v424_v8  ;;  %v420_v11 = vld [vmem:[#allocation7 + $0x68] sm:$0xf]  ;;  %v454_v12 = vld [vmem:[#allocation7 + $0x70] sm:$0xf0]  ;;  %v416_v14 = vld [vmem:[#allocation7 + $0x50] sm:$0xf] }
  0x1d   :  { %244 = vmatpush.bf16.msra.mxu1 %v393_v31  ;;  %v472_v40 = vpop.eup %471  ;;  %v70_v41 = vsub.f32 1.0, %v470_v35  ;;  %306 = vmatpush.bf16.msra.mxu2 %v433_v5  ;;  %v421_v13 = vor.u32 %v454_v12, %v420_v11  ;;  %v453_v15 = vld [vmem:[#allocation7 + $0x58] sm:$0xf0]  ;;  %v412_v17 = vld [vmem:[#allocation7 + $0x38] sm:$0xf]  ;;  %s327_s30 = sshll.u32 %s616_s3, 4  ;;  %s328_s30 = int_to_ptr.hbm [resolvable:$true] %s327_s30 }
  0x1e   :  { %v73_v44 = vsub.f32 1.0, %v472_v40  ;;  %v417_v16 = vor.u32 %v453_v15, %v416_v14  ;;  %v452_v18 = vld [vmem:[#allocation7 + $0x40] sm:$0xf0]  ;;  %v466_v20 = vld [vmem:[#allocation5 + $0x1] ss:$0 sm:$0xff] }
  0x1f   :  { %v413_v19 = vor.u32 %v452_v18, %v412_v17  ;;  %v408_v26 = vld [vmem:[#allocation7 + $0x20] sm:$0xf]  ;;  %v451_v27 = vld [vmem:[#allocation7 + $0x28] sm:$0xf0]  ;;  %v450_v30 = vld [vmem:[#allocation7 + $0x10] sm:$0xf0] }
  0x20   :  { %182 = vmatpush.bf16.msra.mxu0 %v353_v29  ;;  %v74_v48 = vsub.f32 %v73_v44, %v70_v41  ;;  %v409_v28 = vor.u32 %v451_v27, %v408_v26  ;;  %v404_v29 = vld [vmem:[#allocation7 + $0x8] sm:$0xf]  ;;  %v467_v32 = vld [vmem:[#allocation5 + $0x2] ss:$0 sm:$0xff]  ;;  %v468_v38 = vld [vmem:[#allocation5 + $0x3] ss:$0 sm:$0xff] }
  0x21   :  { %245 = vmatpush.bf16.msra.mxu1 %v389_v39  ;;  %307 = vmatpush.bf16.msra.mxu2 %v429_v7  ;;  %v405_v31 = vor.u32 %v450_v30, %v404_v29 }
  0x22   :  { %v76_v54 = vmul.f32 %v464_v45, %v74_v48 }
  0x24   :  { %183 = vmatpush.bf16.msra.mxu0 %v349_v36  ;;  %v78_v56 = vadd.f32 %v465_v49, %v76_v54 }
  0x25   :  { %246 = vmatpush.bf16.msra.mxu1 %v385_v50  ;;  %308 = vmatpush.bf16.msra.mxu2 %v425_v10 }
  0x26   :  { %v79_v58 = vmul.f32 %v78_v56, %v73_v44 }
  0x28   :  { %184 = vmatpush.bf16.msra.mxu0 %v345_v46  ;;  %v128_v59 = vpack.c.bf16 %v79_v58, %v79_v58 }
  0x29   :  { %247 = vmatpush.bf16.msra.mxu1 %v381_v57  ;;  %309 = vmatpush.bf16.msra.mxu2 %v421_v13 }
  0x2c   :  { %185 = vmatpush.bf16.msra.mxu0 %v341_v55 }
  0x2d   :  { %248 = vmatpush.bf16.msra.mxu1 %v377_v62  ;;  %310 = vmatpush.bf16.msra.mxu2 %v417_v16 }
  0x2f   :  { %186 = vmatmul.bf16.vlgmr.msra.gmra.mxu0 %v128_v59 }
  0x31   :  { %249 = vmatpush.bf16.msra.mxu1 %v373_v1  ;;  %311 = vmatpush.bf16.msra.mxu2 %v413_v19 }
  0x35   :  { %312 = vmatpush.bf16.msra.mxu2 %v409_v28 }
  0x39   :  { %313 = vmatpush.bf16.msra.mxu2 %v405_v31 }
  0xac   :  { %v187_v21 = vpop.f32.mrf.mxu0 }
  0xad   :  { %v188_v22 = vadd.f32 %v466_v20, %v187_v21 }
  0xaf   :  { %v191_v23 = vmax.f32 %v188_v22, 0.0 }
  0xb1   :  { %v192_v24 = vpack.c.bf16 %v191_v23, %v191_v23 }
  0xb3   :  { %250 = vmatmul.bf16.vlgmr.msra.gmra.mxu1 %v192_v24 }
  0xb4   :  { %v189_v25 = vpop.f32.mrf.mxu0 }
 0x130   :  { %v251_v33 = vpop.f32.mrf.mxu1 }
 0x131   :  { %v252_v34 = vadd.f32 %v467_v32, %v251_v33 }
 0x133   :  { %v255_v35 = vmax.f32 %v252_v34, 0.0 }
 0x135   :  { %v256_v36 = vpack.c.bf16 %v255_v35, %v255_v35 }
 0x137   :  { %314 = vmatmul.bf16.vlgmr.msra.gmra.mxu2 %v256_v36 }
 0x138   :  { %v253_v37 = vpop.f32.mrf.mxu1 }
 0x1ba   :  { %v315_v39 = vpop.f32.mrf.mxu2 }
 0x1bb   :  { %v316_v40 = vadd.f32 %v468_v38, %v315_v39 }
 0x1bd   :  { %319 = vst [vmem:[#allocation8] sm:$0xff] %v316_v40 }
 0x1be   :  { %330 = dma.vmem_to_hbm [thread:$0]  %s326_s2, 128, %s328_s30, [#allocation4]  }
 0x1c2   :  { %v317_v41 = vpop.f32.mrf.mxu2 }
 0x1c3   :  { %573 = dma.done.wait [#allocation4], 128  }
 0x1c4   :  { %574 = vsyncadd [#allocation4], 4294967168 }
 0x1c5   :  { %335 = vsyncpa [#allocation3], 1 }
 0x1c6   :  { %336 = vsyncpa [#allocation6], 1 }
 0x1c7   :  { %337 = vsyncpa [#allocation4], 1 }

</bundles_post_ra>
